<compile_context>
chip_gen: v7x
topology: tpu7x:2x2x1
jax: 0.10.0
libtpu: 0.0.40
codegen_flags: <defaults>
</compile_context>

<pallas_src>
import functools

import jax
import jax.numpy as jnp
import numpy as np
from jax.experimental import pallas as pl
from jax.experimental.pallas import tpu as pltpu


# ----------------------------------------------------------------------------
# Fused kernel: projection + num_layers stacked-contraction FastGTLayers +
# channel-mean aggregation.  Grid = (num_layers, N // tile_rows), layer outer.
# ----------------------------------------------------------------------------
def _fused_fastgtn_kernel(filt_ref, x_ref, wflat_ref, a_ref, out_ref,
                          xw_s, h_s, b_s, *,
                          num_channels, num_edge_type, num_nodes, w_out,
                          tile_rows, beta, inv_channels):
    # filt_ref : (1, E, C*w_out) f32   per-layer softmaxed conv weights,
    #                                  broadcast to channel column blocks
    # x_ref    : (N, w_in)       f32   node features (resident, constant block)
    # wflat_ref: (w_in, C*w_out) f32   per-channel GCN weights, flattened
    # a_ref    : (tile_rows, E*N) bf16 row slab of stacked adjacency A_flat
    # out_ref  : (tile_rows, w_out) f32
    # xw_s     : (N, C*w_out) f32      X_ (initial projection), all rows
    # h_s      : (N, C*w_out) f32      current H, all rows (updated in place)
    # b_s      : (E*N, C*w_out) bf16   stacked RHS for the current layer
    l = pl.program_id(0)
    i = pl.program_id(1)
    N = num_nodes
    E = num_edge_type
    C = num_channels

    # One-time per-channel projection (collapsed into a single MXU matmul with
    # lane width C*w_out).  Runs only at the very first grid step.
    @pl.when(jnp.logical_and(l == 0, i == 0))
    def _project():
        xw = jnp.dot(x_ref[...], wflat_ref[...],
                     preferred_element_type=jnp.float32)   # (N, C*w_out)
        xw_s[...] = xw
        h_s[...] = xw

    # Once per layer (first row tile): build the stacked RHS
    #   B[e*N:(e+1)*N, c-block] = filt[l, c, e] * H[:, c-block]
    # from the full (all-rows) H of the previous layer.  B is captured before
    # any row tile of this layer overwrites h_s, so h_s can be reused in place.
    @pl.when(i == 0)
    def _build_rhs():
        h = h_s[...]                                        # (N, C*w_out) f32
        scales = filt_ref[0]                                # (E, C*w_out) f32
        for e in range(E):
            b_s[e * N:(e + 1) * N, :] = (
                h * scales[e:e + 1, :]).astype(jnp.bfloat16)

    # Per row tile: one bf16 MXU matmul with f32 accumulation replaces the old
    # E-way f32 VPU combine + per-channel matmuls.
    row0 = pl.multiple_of(i * tile_rows, tile_rows)
    h_new = jnp.dot(a_ref[...], b_s[...],
                    preferred_element_type=jnp.float32)     # (tile_rows, C*w_out)
    h_s[pl.ds(row0, tile_rows), :] = h_new

    # channel_agg == 'mean': relu(beta*X_ + (1-beta)*H) averaged over channels.
    # Written every grid step (cheap); only the last layer's write survives in
    # HBM since grid steps are sequential and write-backs are ordered.
    # TODO(synk): fold rows to a lane-dense (.., 128) output slab if the (tm,32)
    #   masked stores ever show up in the profile.
    x_t = xw_s[pl.ds(row0, tile_rows), :]
    z = jnp.maximum(beta * x_t + (1.0 - beta) * h_new, 0.0)
    acc = z[:, 0:w_out]
    for c in range(1, C):
        acc = acc + z[:, c * w_out:(c + 1) * w_out]
    out_ref[...] = acc * inv_channels


def pyg_fast_gtns_forward(params, A_dense, X, *, beta, num_layers,
                          tile_rows=None):
    C, w_in, w_out = params["Ws"].shape
    N = X.shape[0]
    E = A_dense.shape[0]
    Cw = C * w_out

    if tile_rows is None:
        tile_rows = N if N <= 256 else 256
    assert N % tile_rows == 0, (N, tile_rows)
    assert tile_rows % 8 == 0, tile_rows
    num_row_tiles = N // tile_rows

    # softmax over the edge-type dim of each FastGTConv weight, then broadcast
    # each filt[l, c, e] across that channel's w_out output columns so the
    # kernel's RHS build is a plain row-broadcast multiply.
    filt = jax.nn.softmax(params["conv_w"], axis=-1)            # (L, C, E)
    filt_exp = jnp.repeat(jnp.transpose(filt, (0, 2, 1)),
                          w_out, axis=-1)                       # (L, E, C*w_out)
    filt_exp = filt_exp.astype(jnp.float32)

    # collapse the per-channel projection weights into one (w_in, C*w_out) slab
    w_flat = jnp.transpose(params["Ws"], (1, 0, 2)).reshape(w_in, Cw)

    # stacked adjacency A_flat[i, e*N + j] = A[e, i, j]; quantized to bf16 ONCE
    a_flat = jnp.transpose(A_dense, (1, 0, 2)).reshape(N, E * N)
    a_flat = a_flat.astype(jnp.bfloat16)

    kernel = functools.partial(
        _fused_fastgtn_kernel,
        num_channels=C, num_edge_type=E, num_nodes=N, w_out=w_out,
        tile_rows=tile_rows, beta=float(beta), inv_channels=1.0 / float(C))

    return pl.pallas_call(
        kernel,
        out_shape=jax.ShapeDtypeStruct((N, w_out), jnp.float32),
        grid=(num_layers, num_row_tiles),
        in_specs=[
            pl.BlockSpec((1, E, Cw), lambda l, i: (l, 0, 0)),       # filt_exp
            pl.BlockSpec((N, w_in), lambda l, i: (0, 0)),           # X (resident)
            pl.BlockSpec((w_in, Cw), lambda l, i: (0, 0)),          # W_flat
            pl.BlockSpec((tile_rows, E * N), lambda l, i: (i, 0)),  # A_flat slab
        ],
        out_specs=pl.BlockSpec((tile_rows, w_out), lambda l, i: (i, 0)),
        scratch_shapes=[
            pltpu.VMEM((N, Cw), jnp.float32),        # X_ (all rows)
            pltpu.VMEM((N, Cw), jnp.float32),        # H  (all rows, in-place)
            pltpu.VMEM((E * N, Cw), jnp.bfloat16),   # stacked RHS B
        ],
        compiler_params=pltpu.CompilerParams(
            # Both axes MUST be arbitrary: layer l+1 reads every row tile of
            # layer l through the shared h_s scratch.
            dimension_semantics=("arbitrary", "arbitrary"),
            # 48 MiB is safe on v7x (64 MiB physical VMEM); raise toward
            # ~100 MiB on v5e/v6e for larger row tiles at big N.
            vmem_limit_bytes=48 * 1024 * 1024,
        ),
    )(filt_exp, X, w_flat, a_flat)


# ----------------------------------------------------------------------------
# Pure-JAX reference (f32, highest precision) for correctness checking
# ----------------------------------------------------------------------------
def reference_forward(params, A_dense, X, *, beta, num_layers):
    X_ = jnp.einsum("nf,cfd->cnd", X, params["Ws"], precision="highest")
    H = X_
    for l in range(num_layers):
        filt = jax.nn.softmax(params["conv_w"][l], axis=1)
        Acomb = jnp.einsum("ce,enm->cnm", filt, A_dense, precision="highest")
        H = jnp.einsum("cnm,cmd->cnd", Acomb, H, precision="highest")
    Z = jax.nn.relu(beta * X_ + (1.0 - beta) * H)
    return jnp.mean(Z, axis=0)


if __name__ == "__main__":
    # small shapes consistent with the module
    N = 128         # num_nodes
    W_IN = 16       # w_in
    W_OUT = 32      # args.node_dim
    E = 3           # num_edge_type
    C = 2           # args.num_channels
    NUM_LAYERS = 2  # args.num_layers
    BETA = 0.5      # args.beta
    TILE_ROWS = 64  # 2 row tiles -> exercises the (layer, row-tile) grid

    key = jax.random.PRNGKey(0)
    k_x, k_a, k_ws, k_conv = jax.random.split(key, 4)

    # node features
    X = jax.random.normal(k_x, (N, W_IN), dtype=jnp.float32)

    # dense per-edge-type adjacencies (row-stochastic for numerical stability)
    A_raw = jax.random.uniform(k_a, (E, N, N), dtype=jnp.float32)
    A_dense = A_raw / jnp.sum(A_raw, axis=-1, keepdims=True)

    # parameters (deterministic init matching the module's __init__ shapes)
    # GCNConv.weight (glorot uniform), one per channel
    limit = float(np.sqrt(6.0 / (W_IN + W_OUT)))
    Ws = jax.random.uniform(k_ws, (C, W_IN, W_OUT), dtype=jnp.float32,
                            minval=-limit, maxval=limit)
    # FastGTConv.weight per layer: normal(std=0.1), shape (out_channels=C, in_channels=E)
    conv_w = 0.1 * jax.random.normal(k_conv, (NUM_LAYERS, C, E), dtype=jnp.float32)

    params = {"Ws": Ws, "conv_w": conv_w}

    out = pyg_fast_gtns_forward(params, A_dense, X, beta=BETA,
                                num_layers=NUM_LAYERS, tile_rows=TILE_ROWS)
    out = jax.block_until_ready(out)

    ref = reference_forward(params, A_dense, X, beta=BETA, num_layers=NUM_LAYERS)
    ref = jax.block_until_ready(ref)

    assert out.shape == (N, W_OUT), out.shape
    # tolerance accounts for the single bf16 quantization of A / per-layer RHS
    # (f32 MXU accumulation everywhere)
    np.testing.assert_allclose(np.asarray(out), np.asarray(ref), rtol=2e-2, atol=2e-2)

    print("KERNEL_OK")
</pallas_src>

<mosaic_0001>
module attributes {stable_mosaic.version = 11 : i64} {
  func.func @_fused_fastgtn_kernel(%arg0: i32, %arg1: i32, %arg2: memref<1x3x64xf32, #tpu.memory_space<vmem>>, %arg3: memref<128x16xf32, #tpu.memory_space<vmem>>, %arg4: memref<16x64xf32, #tpu.memory_space<vmem>>, %arg5: memref<64x384xbf16, #tpu.memory_space<vmem>>, %arg6: memref<64x32xf32, #tpu.memory_space<vmem>>, %arg7: memref<128x64xf32, #tpu.memory_space<vmem>>, %arg8: memref<128x64xf32, #tpu.memory_space<vmem>>, %arg9: memref<384x64xbf16, #tpu.memory_space<vmem>>) attributes {dimension_semantics = [#tpu.dimension_semantics<arbitrary>, #tpu.dimension_semantics<arbitrary>], iteration_bounds = array<i64: 2, 2>, scalar_prefetch = 0 : i64, scratch_operands = 3 : i64, tpu.core_type = #tpu.core_type<tc>, window_params = [{transform_indices = @transform_0, window_bounds = array<i64: 1, 3, 64>}, {pipeline_mode = #tpu.pipeline_mode<synchronous>, transform_indices = @transform_1, window_bounds = array<i64: 128, 16>}, {pipeline_mode = #tpu.pipeline_mode<synchronous>, transform_indices = @transform_2, window_bounds = array<i64: 16, 64>}, {transform_indices = @transform_3, window_bounds = array<i64: 64, 384>}, {transform_indices = @transform_4, window_bounds = array<i64: 64, 32>}]} {
    %c0_i32 = arith.constant 0 : i32
    %0 = arith.cmpi eq, %arg0, %c0_i32 : i32
    %c0_i32_0 = arith.constant 0 : i32
    %1 = arith.cmpi eq, %arg1, %c0_i32_0 : i32
    %2 = arith.andi %0, %1 : i1
    %3 = arith.extui %2 : i1 to i32
    %c0_i32_1 = arith.constant 0 : i32
    %4 = arith.cmpi ne, %3, %c0_i32_1 : i32
    scf.if %4 {
      %c0_15 = arith.constant 0 : index
      %c0_16 = arith.constant 0 : index
      %30 = vector.load %arg3[%c0_15, %c0_16] : memref<128x16xf32, #tpu.memory_space<vmem>>, vector<128x16xf32>
      %c0_17 = arith.constant 0 : index
      %c0_18 = arith.constant 0 : index
      %31 = vector.load %arg4[%c0_17, %c0_18] : memref<16x64xf32, #tpu.memory_space<vmem>>, vector<16x64xf32>
      %cst_19 = arith.constant dense<0.000000e+00> : vector<128x64xf32>
      %32 = tpu.matmul %30, %31, %cst_19 {dimension_numbers = #tpu.dot_dimension_numbers<[1], [0], [0], [1], [0, 0, 1, 1], [], []>} : vector<128x16xf32>, vector<16x64xf32>, vector<128x64xf32> -> vector<128x64xf32>
      %c0_20 = arith.constant 0 : index
      %c0_21 = arith.constant 0 : index
      %33 = vector.load %arg7[%c0_20, %c0_21] : memref<128x64xf32, #tpu.memory_space<vmem>>, vector<128x64xf32>
      tpu.vector_store %arg7[%c0_20, %c0_21], %32 {strides = array<i32>} : memref<128x64xf32, #tpu.memory_space<vmem>>, vector<128x64xf32>,
      %c0_22 = arith.constant 0 : index
      %c0_23 = arith.constant 0 : index
      %34 = vector.load %arg8[%c0_22, %c0_23] : memref<128x64xf32, #tpu.memory_space<vmem>>, vector<128x64xf32>
      tpu.vector_store %arg8[%c0_22, %c0_23], %32 {strides = array<i32>} : memref<128x64xf32, #tpu.memory_space<vmem>>, vector<128x64xf32>,
    } else {
    }
    %c0_i32_2 = arith.constant 0 : i32
    %5 = arith.cmpi eq, %arg1, %c0_i32_2 : i32
    %6 = arith.extui %5 : i1 to i32
    %c0_i32_3 = arith.constant 0 : i32
    %7 = arith.cmpi ne, %6, %c0_i32_3 : i32
    scf.if %7 {
      %c0_15 = arith.constant 0 : index
      %c0_16 = arith.constant 0 : index
      %30 = vector.load %arg8[%c0_15, %c0_16] : memref<128x64xf32, #tpu.memory_space<vmem>>, vector<128x64xf32>
      %c0_17 = arith.constant 0 : index
      %c0_18 = arith.constant 0 : index
      %c0_19 = arith.constant 0 : index
      %31 = vector.load %arg2[%c0_17, %c0_18, %c0_19] : memref<1x3x64xf32, #tpu.memory_space<vmem>>, vector<1x3x64xf32>
      %32 = vector.shape_cast %31 : vector<1x3x64xf32> to vector<3x64xf32>
      %33 = vector.extract_strided_slice %32 {offsets = [0, 0], sizes = [1, 64], strides = [1, 1]} : vector<3x64xf32> to vector<1x64xf32>
      %34 = vector.broadcast %33 : vector<1x64xf32> to vector<128x64xf32>
      %35 = arith.mulf %30, %34 : vector<128x64xf32>
      %36 = arith.truncf %35 : vector<128x64xf32> to vector<128x64xbf16>
      %c0_20 = arith.constant 0 : index
      %c0_21 = arith.constant 0 : index
      %37 = vector.load %arg9[%c0_20, %c0_21] : memref<384x64xbf16, #tpu.memory_space<vmem>>, vector<128x64xbf16>
      tpu.vector_store %arg9[%c0_20, %c0_21], %36 {strides = array<i32>} : memref<384x64xbf16, #tpu.memory_space<vmem>>, vector<128x64xbf16>,
      %38 = vector.extract_strided_slice %32 {offsets = [1, 0], sizes = [1, 64], strides = [1, 1]} : vector<3x64xf32> to vector<1x64xf32>
      %39 = vector.broadcast %38 : vector<1x64xf32> to vector<128x64xf32>
      %40 = arith.mulf %30, %39 : vector<128x64xf32>
      %41 = arith.truncf %40 : vector<128x64xf32> to vector<128x64xbf16>
      %c128 = arith.constant 128 : index
      %c0_22 = arith.constant 0 : index
      %42 = vector.load %arg9[%c128, %c0_22] : memref<384x64xbf16, #tpu.memory_space<vmem>>, vector<128x64xbf16>
      tpu.vector_store %arg9[%c128, %c0_22], %41 {strides = array<i32>} : memref<384x64xbf16, #tpu.memory_space<vmem>>, vector<128x64xbf16>,
      %43 = vector.extract_strided_slice %32 {offsets = [2, 0], sizes = [1, 64], strides = [1, 1]} : vector<3x64xf32> to vector<1x64xf32>
      %44 = vector.broadcast %43 : vector<1x64xf32> to vector<128x64xf32>
      %45 = arith.mulf %30, %44 : vector<128x64xf32>
      %46 = arith.truncf %45 : vector<128x64xf32> to vector<128x64xbf16>
      %c256 = arith.constant 256 : index
      %c0_23 = arith.constant 0 : index
      %47 = vector.load %arg9[%c256, %c0_23] : memref<384x64xbf16, #tpu.memory_space<vmem>>, vector<128x64xbf16>
      tpu.vector_store %arg9[%c256, %c0_23], %46 {strides = array<i32>} : memref<384x64xbf16, #tpu.memory_space<vmem>>, vector<128x64xbf16>,
    } else {
    }
    %c64_i32 = arith.constant 64 : i32
    %8 = arith.muli %arg1, %c64_i32 : i32
    %9 = tpu.assume_multiple %8, 64 : i32
    %c0 = arith.constant 0 : index
    %c0_4 = arith.constant 0 : index
    %10 = vector.load %arg5[%c0, %c0_4] : memref<64x384xbf16, #tpu.memory_space<vmem>>, vector<64x384xbf16>
    %c0_5 = arith.constant 0 : index
    %c0_6 = arith.constant 0 : index
    %11 = vector.load %arg9[%c0_5, %c0_6] : memref<384x64xbf16, #tpu.memory_space<vmem>>, vector<384x64xbf16>
    %cst = arith.constant dense<0.000000e+00> : vector<64x64xf32>
    %12 = tpu.matmul %10, %11, %cst {dimension_numbers = #tpu.dot_dimension_numbers<[1], [0], [0], [1], [0, 0, 1, 1], [], []>} : vector<64x384xbf16>, vector<384x64xbf16>, vector<64x64xf32> -> vector<64x64xf32>
    %13 = arith.index_cast %9 : i32 to index
    %c0_7 = arith.constant 0 : index
    %14 = vector.load %arg8[%13, %c0_7] : memref<128x64xf32, #tpu.memory_space<vmem>>, vector<64x64xf32>
    tpu.vector_store %arg8[%13, %c0_7], %12 {strides = array<i32>} : memref<128x64xf32, #tpu.memory_space<vmem>>, vector<64x64xf32>,
    %15 = arith.index_cast %9 : i32 to index
    %c0_8 = arith.constant 0 : index
    %16 = vector.load %arg7[%15, %c0_8] : memref<128x64xf32, #tpu.memory_space<vmem>>, vector<64x64xf32>
    %cst_9 = arith.constant 5.000000e-01 : f32
    %17 = vector.broadcast %cst_9 : f32 to vector<64x64xf32>
    %18 = arith.mulf %17, %16 : vector<64x64xf32>
    %cst_10 = arith.constant 5.000000e-01 : f32
    %19 = vector.broadcast %cst_10 : f32 to vector<64x64xf32>
    %20 = arith.mulf %19, %12 : vector<64x64xf32>
    %21 = arith.addf %18, %20 : vector<64x64xf32>
    %cst_11 = arith.constant 0.000000e+00 : f32
    %22 = vector.broadcast %cst_11 : f32 to vector<64x64xf32>
    %23 = arith.maximumf %21, %22 : vector<64x64xf32>
    %24 = vector.extract_strided_slice %23 {offsets = [0, 0], sizes = [64, 32], strides = [1, 1]} : vector<64x64xf32> to vector<64x32xf32>
    %25 = vector.extract_strided_slice %23 {offsets = [0, 32], sizes = [64, 32], strides = [1, 1]} : vector<64x64xf32> to vector<64x32xf32>
    %26 = arith.addf %24, %25 : vector<64x32xf32>
    %cst_12 = arith.constant 5.000000e-01 : f32
    %27 = vector.broadcast %cst_12 : f32 to vector<64x32xf32>
    %28 = arith.mulf %26, %27 : vector<64x32xf32>
    %c0_13 = arith.constant 0 : index
    %c0_14 = arith.constant 0 : index
    %29 = vector.load %arg6[%c0_13, %c0_14] : memref<64x32xf32, #tpu.memory_space<vmem>>, vector<64x32xf32>
    tpu.vector_store %arg6[%c0_13, %c0_14], %28 {strides = array<i32>} : memref<64x32xf32, #tpu.memory_space<vmem>>, vector<64x32xf32>,
    return
  }
  func.func @transform_0(%arg0: i32, %arg1: i32) -> (i32, i32, i32) {
    %c0_i32 = arith.constant 0 : i32
    %c0_i32_0 = arith.constant 0 : i32
    %c0_i32_1 = arith.constant 0 : i32
    return %arg0, %c0_i32, %c0_i32_0 : i32, i32, i32
  }
  func.func @transform_1(%arg0: i32, %arg1: i32) -> (i32, i32) {
    %c0_i32 = arith.constant 0 : i32
    %c0_i32_0 = arith.constant 0 : i32
    %c0_i32_1 = arith.constant 0 : i32
    return %c0_i32, %c0_i32_0 : i32, i32
  }
  func.func @transform_2(%arg0: i32, %arg1: i32) -> (i32, i32) {
    %c0_i32 = arith.constant 0 : i32
    %c0_i32_0 = arith.constant 0 : i32
    %c0_i32_1 = arith.constant 0 : i32
    return %c0_i32, %c0_i32_0 : i32, i32
  }
  func.func @transform_3(%arg0: i32, %arg1: i32) -> (i32, i32) {
    %c0_i32 = arith.constant 0 : i32
    %c0_i32_0 = arith.constant 0 : i32
    return %arg1, %c0_i32 : i32, i32
  }
  func.func @transform_4(%arg0: i32, %arg1: i32) -> (i32, i32) {
    %c0_i32 = arith.constant 0 : i32
    %c0_i32_0 = arith.constant 0 : i32
    return %arg1, %c0_i32 : i32, i32
  }
}

</mosaic_0001>

<bundles_post_ra>
// kernel: tpu_custom_call.1
= control target key start
LH: loop header
LB: loop body
LE: loop exit
PB: predicated region body
PF: predicated region fallthrough
CT: control target
= control target key end

     0   :  { %9 = vsyncpa [#allocation6], 0  ;;  %s1929_s0 = inlined_call_operand.vmem [shape: f32[2,3,64], index: 0, kind: input, shape index: {}]   ;;  %s1930_s1 = inlined_call_operand.vmem [shape: f32[128,16], index: 1, kind: input, shape index: {}]   ;;  %s1931_s2 = inlined_call_operand.vmem [shape: f32[16,64], index: 2, kind: input, shape index: {}]   ;;  %s1932_s3 = inlined_call_operand.hbm [shape: bf16[128,384], index: 3, kind: input, shape index: {}]   ;;  %s1933_s4 = inlined_call_operand.vmem [shape: f32[128,32], index: 4, kind: output, shape index: {}]  }
   0x1   :  { %11 = vsyncpa [#allocation6 + $0x1], 0  ;;  %s1460_s15 = smov 0   ;;  %s1462_s16 = smov 0  }
   0x2   :  { %s1464_s17 = smov 0   ;;  %s1466_s18 = smov 0  }
   0x3   :  { %s1468_s19 = smov 0   ;;  %s1470_s20 = smov 0  }
   0x4   :  { %s1472_s21 = smov 0   ;;  %s1474_s22 = smov 0  }
   0x5 LB: > { %s1069_s23 = sadd.s32 4294967295, %s1429_s22   ;;  %s26_s24 = sadd.s32 1, %s1421_s20  ;;  %s1429_s22 = sphi %s1474_s22, %s17_s22   ;;  %s1425_s21 = sphi %s1472_s21, %s1942_s21   ;;  %s1421_s20 = sphi %s1470_s20, %s1941_s20   ;;  %s1417_s19 = sphi %s1468_s19, %s1940_s19   ;;  %s1413_s18 = sphi %s1466_s18, %s1939_s18   ;;  %s1409_s17 = sphi %s1464_s17, %s1938_s17   ;;  %s1405_s16 = sphi %s1462_s16, %s1937_s16   ;;  %s1401_s15 = sphi %s1460_s15, %s1936_s15  }
   0x6   : > { %p27_p0 = scmp.ge.s32.totalorder %s26_s24, 2  ;;  %s29_s25 = sadd.s32 1, %s1425_s21 }
   0x7   : > { %s104_s26 = sadd.s32 1, %s1409_s17  ;;  %p111_p1 = scmp.ne.s32.totalorder %s1409_s17, %s1405_s16 }
   0x8   : > { %s1944_s24 = smov (%p27_p0, %s26_s24), 0  ;;  %s1946_s25 = smov (!%p27_p0, %s29_s25), %s1425_s21 }
   0x9   : > { %s101_s27 = ssub.s32 %s1421_s20, %s1944_s24  ;;  %p112_p2 = scmp.eq.s32.totalorder %s1429_s22, 0 }
   0xa   : > { %p31_p3 = scmp.ge.s32.totalorder %s1946_s25, 2  ;;  %p102_p4 = scmp.eq.s32.totalorder %s101_s27, 0 }
   0xb   : > { %p113_p5 = por %p112_p2, %p111_p1  ;;  %p117_p6 = scmp.ne.s32.totalorder %s1405_s16, %s1401_s15 }
   0xc   : > { %s1948_s25 = smov (%p31_p3, %s1946_s25), 0  ;;  %p118_p7 = scmp.eq.s32.totalorder %s1069_s23, 0 }
   0xd   : > { %s1514_s28 = scalar_select %p102_p4, %s1409_s17, %s104_s26  }
   0xe   : > { %p1249_p8 = scmp.lt.s32.totalorder %s1429_s22, 4  ;;  %s180_s29 = sand.u32 1, %s1409_s17  }
   0xf   : > { %p1518_p9 = por %p118_p7, %p117_p6  ;;  %s1240_s5 = smul.u32 96, %s180_s29 }
  0x10   : > { %p1522_p10 = pnand %p1249_p8, %p113_p5  ;;  %s1241_s7 = smul.u32 1536, %s1421_s20 }
  0x11   : > { %s184_s11 = scalar_lea.vmem [#allocation5], %s1240_s5  ;;  %s1534_s13 = scalar_lea.sflag [#allocation6], %s180_s29 }
  0x12   : > { %s1530_s10 = scalar_lea.hbm %s1932_s3, %s1241_s7  ;;  %s192_s12 = sshll.u32 %s184_s11, 4  ;;  %s1532_s12 = int_to_ptr.vmem [resolvable:$true] %s192_s12 }
  0x13   : > { %s1333_s14 = scalar_lea.hbm %s1530_s10, 1536  ;;  %p1335_p12 = pneg %p1522_p10 }
  0x14   : > { %p1334_p11 = scmp.ne.s32.totalorder %s1530_s10, %s1333_s14  ;;  %s1338_s26 = scalar_lea.hbm %s1932_s3, 3072 }
  0x15   : > { %p1339_p1 = scmp.lt.u32.totalorder %s1530_s10, %s1932_s3  ;;  %p1340_p2 = scmp.lt.u32.totalorder %s1338_s26, %s1333_s14 }
  0x16   : > { %p1336_p13 = pnand %p1335_p12, %p1334_p11  ;;  %p1342_p4 = scmp.lt.u32.totalorder %s1333_s14, %s1530_s10 }
  0x17   : > { %p1341_p3 = por %p1340_p2, %p1339_p1 }
  0x18   : > { %p1337_p0 = pneg %p1336_p13 }
  0x19   : > { %p1343_p5 = por %p1342_p4, %p1341_p3 }
  0x1b   : > { %p1344_p6 = pnand %p1343_p5, %p1337_p0 }
  0x1d   : > { %1347 = shalt.err (!%p1344_p6)
}
  0x1e   : > { %s1348_s29 = scalar_lea.vmem %s1532_s12, 1536  ;;  %s1431_s5 = smov [#allocation5]  }
  0x1f   : > { %p1349_p7 = scmp.ne.s32.totalorder %s1532_s12, %s1348_s29  ;;  %s1353_s8 = sshll.u32 %s1431_s5, 4  ;;  %s1354_s8 = int_to_ptr.vmem [resolvable:$false] %s1353_s8 }
  0x20   : > { %s1355_s9 = scalar_lea.vmem %s1354_s8, 3072  ;;  %p1356_p13 = scmp.lt.s32.totalorder %s1532_s12, %s1354_s8 }
  0x21   : > { %p1351_p8 = pnand %p1349_p7, %p1335_p12  ;;  %p1357_p1 = scmp.lt.s32.totalorder %s1355_s9, %s1348_s29 }
  0x23   : > { %p1352_p11 = pneg %p1351_p8  ;;  %p1358_p2 = por %p1357_p1, %p1356_p13 }
  0x25   : > { %p1359_p3 = pnand %p1358_p2, %p1352_p11 }
  0x27   : > { %1362 = shalt.err (!%p1359_p3)
}
  0x28   : > { %s1432_s11 = smov 192   ;;  %s1433_s14 = smov 12  }
  0x29   : > { %1248 = dma.hbm_to_vmem [thread:$0]  (!%p1522_p10), %s1530_s10, 1536, %s1532_s12, %s1534_s13, %s1432_s11, %s1432_s11, %s1433_s14  }
  0x2a   : > { %p1076_p12 = scmp.ge.s32.totalorder %s1429_s22, 1  ;;  %p200_p0 = scmp.lt.s32.totalorder %s1429_s22, 5 }
  0x2c   : > { %p201_p4 = pnand %p1076_p12, %p200_p0 }
  0x2d   : > { %s206_s15 = sand.u32 (!%p201_p4), 1, %s1405_s16  }
  0x2e   : > { %204 = sbr.rel (%p201_p4) target bundleno = 729 (0x2d9), region = 36  ;;  %s207_s26 = scalar_lea.sflag (!%p201_p4), [#allocation6], %s206_s15 }
  0x2f   : > { %s1242_s23 = smul.u32 (!%p201_p4), 96, %s206_s15 }
  0x31   : > { %s1565_s27 = scalar_lea.vmem (!%p201_p4), [#allocation5], %s1242_s23 }
  0x35   : > { %1396 = dma.done.wait (%p1518_p9), %s207_s26, 1536  }
  0x36   : > { %1398 = vsyncadd (%p1518_p9), %s207_s26, 4294965760  ;;  %p239_p10 = scmp.lt.s32.totalorder %s1417_s19, 1  ;;  %s1078_s6 = sshll.u32 %s1413_s18, 3 }
  0x37   : > { %p245_p5 = scmp.lt.s32.totalorder %s1078_s6, 15  ;;  %p251_p6 = scmp.eq.s32.totalorder %s1417_s19, 0 }
  0x38   : > { %s1950_s19 = smov (!%p239_p10, %s1417_s19), 1  ;;  %p252_p7 = scmp.eq.s32.totalorder %s1413_s18, 0 }
  0x39   : > { %s1952_s6 = smov (!%p245_p5, %s1078_s6), 15  ;;  %s1077_s10 = sshll.u32 %s1950_s19, 2 }
  0x3a   : > { %s1579_s7 = scalar_lea.vmem %s1929_s0, %s1077_s10  ;;  %s1079_s30 = sshll.u32 %s1952_s6, 3 }
  0x3b   : > { %s1584_s8 = scalar_lea.vmem %s1933_s4, %s1079_s30  ;;  %p253_p9 = pnand %p252_p7, %p251_p6 }
  0x3c   : > { %v273_v0 = vld [vmem:[%s1931_s2] sm:$0xff] (!%p253_p9)  ;;  %v274_v1 = vld [vmem:[%s1931_s2 + $0x8] sm:$0xff] (!%p253_p9)  ;;  %vm275_vm0 = vcmask (!%p253_p9), 130048   ;;  %v259_v7 = vld [vmem:[%s1930_s1 + $0x10] sm:$0xff] (!%p253_p9)  ;;  %vm469_vm1 = vcmask (!%p253_p9), 523264  }
  0x3d   : > { %256 = sbr.rel (%p253_p9) target bundleno = 295 (0x127), region = 44  ;;  %v257_v2 = vld [vmem:[%s1930_s1] sm:$0xff] (!%p253_p9)  ;;  %v1234_v3 = vpack.c.bf16 (!%p253_p9), %v274_v1, %v273_v0  ;;  %v258_v5 = vld [vmem:[%s1930_s1 + $0x8] sm:$0xff] (!%p253_p9)  ;;  %v267_v8 = vld [vmem:[%s1930_s1 + $0x50] sm:$0xff] (!%p253_p9) }
  0x3e   : > { %1186 = vmatprep.mubr.msk.f32.mxu0 (!%p253_p9), %vm275_vm0, %v257_v2  ;;  %v265_v4 = vld [vmem:[%s1930_s1 + $0x40] sm:$0xff] (!%p253_p9)  ;;  %v266_v6 = vld [vmem:[%s1930_s1 + $0x48] sm:$0xff] (!%p253_p9)  ;;  %v260_v9 = vld [vmem:[%s1930_s1 + $0x18] sm:$0xff] (!%p253_p9) }
  0x3f   : > { %1198 = vmatprep.mubr.msk.f32.mxu1 (!%p253_p9), %vm275_vm0, %v265_v4  ;;  %1235 = vmatprep.subr.bf16.mxu0 (!%p253_p9), %v1234_v3  ;;  %v268_v10 = vld [vmem:[%s1930_s1 + $0x58] sm:$0xff] (!%p253_p9)  ;;  %v261_v11 = vld [vmem:[%s1930_s1 + $0x20] sm:$0xff] (!%p253_p9)  ;;  %v262_v13 = vld [vmem:[%s1930_s1 + $0x28] sm:$0xff] (!%p253_p9) }
  0x40   : > { %1238 = vmatprep.subr.bf16.mxu1 (!%p253_p9), %v1234_v3  ;;  %1237 = vmatpush3.bf16.msra.mxu0 (!%p253_p9), %v1234_v3  ;;  %v269_v12 = vld [vmem:[%s1930_s1 + $0x60] sm:$0xff] (!%p253_p9)  ;;  %v270_v14 = vld [vmem:[%s1930_s1 + $0x68] sm:$0xff] (!%p253_p9)  ;;  %v263_v15 = vld [vmem:[%s1930_s1 + $0x30] sm:$0xff] (!%p253_p9) }
  0x41   : > { %1239 = vmatpush3.bf16.msra.mxu1 (!%p253_p9), %v1234_v3  ;;  %v271_v16 = vld [vmem:[%s1930_s1 + $0x70] sm:$0xff] (!%p253_p9)  ;;  %v264_v17 = vld [vmem:[%s1930_s1 + $0x38] sm:$0xff] (!%p253_p9) }
  0x42   : > { %v272_v18 = vld [vmem:[%s1930_s1 + $0x78] sm:$0xff] (!%p253_p9) }
  0x43   : > { %1187 = vmatmul.mubr.msk.f32.vlgmr.msra.gmra.mrb[0].mxu0 (!%p253_p9), %vm275_vm0, %v258_v5 }
  0x44   : > { %1199 = vmatmul.mubr.msk.f32.vlgmr.msra.gmra.mrb[0].mxu1 %vm275_vm0, %v266_v6  ;;  %1189 = vmatprep.mubr.msk.f32.mxu0 %vm275_vm0, %v259_v7 }
  0x45   : > { %1201 = vmatprep.mubr.msk.f32.mxu1 %vm275_vm0, %v267_v8 }
  0x47   : > { %1190 = vmatmul.mubr.msk.f32.gmra.mrb[2].mxu0 %vm275_vm0, %v260_v9 }
  0x48   : > { %1202 = vmatmul.mubr.msk.f32.gmra.mrb[2].mxu1 %vm275_vm0, %v268_v10  ;;  %1192 = vmatprep.mubr.msk.f32.mxu0 %vm275_vm0, %v261_v11 }
  0x49   : > { %1204 = vmatprep.mubr.msk.f32.mxu1 %vm275_vm0, %v269_v12 }
  0x4b   : > { %1193 = vmatmul.mubr.msk.f32.gmra.mrb[4].mxu0 %vm275_vm0, %v262_v13 }
  0x4c   : > { %1205 = vmatmul.mubr.msk.f32.gmra.mrb[4].mxu1 %vm275_vm0, %v270_v14  ;;  %1195 = vmatprep.mubr.msk.f32.mxu0 %vm275_vm0, %v263_v15 }
  0x4d   : > { %1207 = vmatprep.mubr.msk.f32.mxu1 %vm275_vm0, %v271_v16 }
  0x4f   : > { %1196 = vmatmul.mubr.msk.f32.gmra.mrb[6].mxu0 %vm275_vm0, %v264_v17 }
  0x50   : > { %1208 = vmatmul.mubr.msk.f32.gmra.mrb[6].mxu1 %vm275_vm0, %v272_v18 }
 0x116   : > { %v1188_v19 = vpop.f32.mrb[0].mxu0 }
 0x117   : > { %v1200_v20 = vpop.f32.mrb[0].mxu1  ;;  %471 = vst.msk [vmem:[#allocation2 + $0x8] sm:$0xff] %vm469_vm1, %v1188_v19  ;;  %487 = vst.msk [vmem:[#allocation3 + $0x8] sm:$0xff] %vm469_vm1, %v1188_v19  ;;  %v390_v21 = vpop.f32.mrb[1].mxu0 }
 0x118   : > { %479 = vst.msk [vmem:[#allocation2 + $0x48] sm:$0xff] %vm469_vm1, %v1200_v20  ;;  %495 = vst.msk [vmem:[#allocation3 + $0x48] sm:$0xff] %vm469_vm1, %v1200_v20  ;;  %v430_v22 = vpop.f32.mrb[1].mxu1 }
 0x119   : > { %470 = vst.msk [vmem:[#allocation2] sm:$0xff] %vm469_vm1, %v390_v21  ;;  %486 = vst.msk [vmem:[#allocation3] sm:$0xff] %vm469_vm1, %v390_v21 }
 0x11a   : > { %478 = vst.msk [vmem:[#allocation2 + $0x40] sm:$0xff] %vm469_vm1, %v430_v22  ;;  %494 = vst.msk [vmem:[#allocation3 + $0x40] sm:$0xff] %vm469_vm1, %v430_v22  ;;  %v1191_v23 = vpop.f32.mrb[2].mxu0 }
 0x11b   : > { %v1203_v24 = vpop.f32.mrb[2].mxu1  ;;  %473 = vst.msk [vmem:[#allocation2 + $0x18] sm:$0xff] %vm469_vm1, %v1191_v23  ;;  %489 = vst.msk [vmem:[#allocation3 + $0x18] sm:$0xff] %vm469_vm1, %v1191_v23  ;;  %v400_v25 = vpop.f32.mrb[3].mxu0 }
 0x11c   : > { %481 = vst.msk [vmem:[#allocation2 + $0x58] sm:$0xff] %vm469_vm1, %v1203_v24  ;;  %497 = vst.msk [vmem:[#allocation3 + $0x58] sm:$0xff] %vm469_vm1, %v1203_v24  ;;  %v440_v26 = vpop.f32.mrb[3].mxu1 }
 0x11d   : > { %472 = vst.msk [vmem:[#allocation2 + $0x10] sm:$0xff] %vm469_vm1, %v400_v25  ;;  %488 = vst.msk [vmem:[#allocation3 + $0x10] sm:$0xff] %vm469_vm1, %v400_v25 }
 0x11e   : > { %480 = vst.msk [vmem:[#allocation2 + $0x50] sm:$0xff] %vm469_vm1, %v440_v26  ;;  %496 = vst.msk [vmem:[#allocation3 + $0x50] sm:$0xff] %vm469_vm1, %v440_v26  ;;  %v1194_v27 = vpop.f32.mrb[4].mxu0 }
 0x11f   : > { %v1206_v28 = vpop.f32.mrb[4].mxu1  ;;  %475 = vst.msk [vmem:[#allocation2 + $0x28] sm:$0xff] %vm469_vm1, %v1194_v27  ;;  %491 = vst.msk [vmem:[#allocation3 + $0x28] sm:$0xff] %vm469_vm1, %v1194_v27  ;;  %v410_v29 = vpop.f32.mrb[5].mxu0 }
 0x120   : > { %483 = vst.msk [vmem:[#allocation2 + $0x68] sm:$0xff] %vm469_vm1, %v1206_v28  ;;  %499 = vst.msk [vmem:[#allocation3 + $0x68] sm:$0xff] %vm469_vm1, %v1206_v28  ;;  %v450_v30 = vpop.f32.mrb[5].mxu1 }
 0x121   : > { %474 = vst.msk [vmem:[#allocation2 + $0x20] sm:$0xff] %vm469_vm1, %v410_v29  ;;  %490 = vst.msk [vmem:[#allocation3 + $0x20] sm:$0xff] %vm469_vm1, %v410_v29 }
 0x122   : > { %482 = vst.msk [vmem:[#allocation2 + $0x60] sm:$0xff] %vm469_vm1, %v450_v30  ;;  %498 = vst.msk [vmem:[#allocation3 + $0x60] sm:$0xff] %vm469_vm1, %v450_v30  ;;  %v1197_v31 = vpop.f32.mrb[6].mxu0 }
 0x123   : > { %v1209_v32 = vpop.f32.mrb[6].mxu1  ;;  %477 = vst.msk [vmem:[#allocation2 + $0x38] sm:$0xff] %vm469_vm1, %v1197_v31  ;;  %493 = vst.msk [vmem:[#allocation3 + $0x38] sm:$0xff] %vm469_vm1, %v1197_v31  ;;  %v420_v33 = vpop.f32.mrb[7].mxu0 }
 0x124   : > { %485 = vst.msk [vmem:[#allocation2 + $0x78] sm:$0xff] %vm469_vm1, %v1209_v32  ;;  %501 = vst.msk [vmem:[#allocation3 + $0x78] sm:$0xff] %vm469_vm1, %v1209_v32  ;;  %v460_v34 = vpop.f32.mrb[7].mxu1 }
 0x125   : > { %476 = vst.msk [vmem:[#allocation2 + $0x30] sm:$0xff] %vm469_vm1, %v420_v33  ;;  %492 = vst.msk [vmem:[#allocation3 + $0x30] sm:$0xff] %vm469_vm1, %v420_v33 }
 0x126   : > { %484 = vst.msk [vmem:[#allocation2 + $0x70] sm:$0xff] %vm469_vm1, %v460_v34  ;;  %500 = vst.msk [vmem:[#allocation3 + $0x70] sm:$0xff] %vm469_vm1, %v460_v34 }
 0x127 PF: > { %p1096_p8 = scmp.ne.s32.totalorder %s1413_s18, 0 }
 0x128   : > { %v522_v35 = vlaneseq (!%p1096_p8)  ;;  %v521_v37 = vld [vmem:[%s1579_s7] sm:$0x7] (!%p1096_p8)  ;;  %v1692_v39 = vld [vmem:[#allocation3 + $0x8] sm:$0xff] (!%p1096_p8)  ;;  %v1694_v43 = vld [vmem:[#allocation3 + $0x10] sm:$0xff] (!%p1096_p8)  ;;  %vm550_vm2 = vcmask (!%p1096_p8), 523264  }
 0x129   : > { %504 = sbr.rel (%p1096_p8) target bundleno = 327 (0x147), region = 48  ;;  %v1690_v38 = vld [vmem:[#allocation3] sm:$0xff] (!%p1096_p8)  ;;  %v1696_v44 = vld [vmem:[#allocation3 + $0x18] sm:$0xff] (!%p1096_p8)  ;;  %v1700_v47 = vld [vmem:[#allocation3 + $0x28] sm:$0xff] (!%p1096_p8) }
 0x12a   : > { %v523_v36 = vshrl.u32 (!%p1096_p8), %v522_v35, 7  ;;  %v1698_v45 = vld [vmem:[#allocation3 + $0x20] sm:$0xff] (!%p1096_p8)  ;;  %v1704_v49 = vld [vmem:[#allocation3 + $0x38] sm:$0xff] (!%p1096_p8)  ;;  %v1708_v51 = vld [vmem:[#allocation3 + $0x48] sm:$0xff] (!%p1096_p8) }
 0x12b   : > { %v1706_v50 = vld [vmem:[#allocation3 + $0x40] sm:$0xff] (!%p1096_p8)  ;;  %v1718_v58 = vld [vmem:[#allocation3 + $0x50] sm:$0xff] (!%p1096_p8)  ;;  %v1720_v59 = vld [vmem:[#allocation3 + $0x58] sm:$0xff] (!%p1096_p8) }
 0x12c   : > { %v524_v40 = vsub.s32 (!%p1096_p8), 0, %v523_v36  ;;  %v561_v41 = vsub.s32 (!%p1096_p8), 1, %v523_v36  ;;  %v597_v42 = vsub.s32 (!%p1096_p8), 2, %v523_v36  ;;  %v1702_v48 = vld [vmem:[#allocation3 + $0x30] sm:$0xff] (!%p1096_p8)  ;;  %v1726_v0 = vld [vmem:[#allocation3 + $0x60] sm:$0xff] (!%p1096_p8)  ;;  %v1728_v1 = vld [vmem:[#allocation3 + $0x68] sm:$0xff] (!%p1096_p8) }
 0x12d   : > { %v1730_v2 = vld [vmem:[#allocation3 + $0x70] sm:$0xff] (!%p1096_p8)  ;;  %v1734_v7 = vld [vmem:[#allocation3 + $0x78] sm:$0xff] (!%p1096_p8) }
 0x12e   : > { %v525_v46 = vrot.slane (!%p1096_p8), %v521_v37, %v524_v40  ;;  %v1710_v52 = vrot.slane (!%p1096_p8), %v521_v37, %v561_v41  ;;  %v1712_v53 = vrot.slane (!%p1096_p8), %v521_v37, %v597_v42 }
 0x130   : > { %v526_v54 = vmul.f32 %v525_v46, %v1690_v38  ;;  %v527_v55 = vmul.f32 %v525_v46, %v1692_v39  ;;  %v528_v56 = vmul.f32 %v525_v46, %v1694_v43  ;;  %v529_v57 = vmul.f32 %v525_v46, %v1696_v44 }
 0x131   : > { %v530_v60 = vmul.f32 %v525_v46, %v1698_v45  ;;  %v531_v61 = vmul.f32 %v525_v46, %v1700_v47  ;;  %v532_v62 = vmul.f32 %v525_v46, %v1702_v48  ;;  %v533_v63 = vmul.f32 %v525_v46, %v1704_v49 }
 0x132   : > { %v542_v3 = vpack.c.bf16 %v527_v55, %v526_v54  ;;  %v543_v4 = vpack.c.bf16 %v529_v57, %v528_v56  ;;  %v534_v5 = vmul.f32 %v525_v46, %v1706_v50  ;;  %v535_v6 = vmul.f32 %v525_v46, %v1708_v51 }
 0x133   : > { %v544_v8 = vpack.c.bf16 %v531_v61, %v530_v60  ;;  %v545_v9 = vpack.c.bf16 %v533_v63, %v532_v62  ;;  %v536_v10 = vmul.f32 %v525_v46, %v1718_v58  ;;  %v537_v11 = vmul.f32 %v525_v46, %v1720_v59 }
 0x134   : > { %551 = vst.msk [vmem:[#allocation4] sm:$0xff] %vm550_vm2, %v542_v3  ;;  %552 = vst.msk [vmem:[#allocation4 + $0x8] sm:$0xff] %vm550_vm2, %v543_v4  ;;  %v546_v12 = vpack.c.bf16 %v535_v6, %v534_v5  ;;  %v538_v13 = vmul.f32 %v525_v46, %v1726_v0  ;;  %v539_v14 = vmul.f32 %v525_v46, %v1728_v1 }
 0x135   : > { %v540_v15 = vmul.f32 %v525_v46, %v1730_v2  ;;  %553 = vst.msk [vmem:[#allocation4 + $0x10] sm:$0xff] %vm550_vm2, %v544_v8  ;;  %554 = vst.msk [vmem:[#allocation4 + $0x18] sm:$0xff] %vm550_vm2, %v545_v9  ;;  %v547_v16 = vpack.c.bf16 %v537_v11, %v536_v10  ;;  %v541_v17 = vmul.f32 %v525_v46, %v1734_v7 }
 0x136   : > { %v563_v18 = vmul.f32 %v1710_v52, %v1690_v38  ;;  %v564_v19 = vmul.f32 %v1710_v52, %v1692_v39  ;;  %555 = vst.msk [vmem:[#allocation4 + $0x20] sm:$0xff] %vm550_vm2, %v546_v12  ;;  %v548_v20 = vpack.c.bf16 %v539_v14, %v538_v13  ;;  %v565_v21 = vmul.f32 %v1710_v52, %v1694_v43 }
 0x137   : > { %v566_v22 = vmul.f32 %v1710_v52, %v1696_v44  ;;  %v567_v23 = vmul.f32 %v1710_v52, %v1698_v45  ;;  %556 = vst.msk [vmem:[#allocation4 + $0x28] sm:$0xff] %vm550_vm2, %v547_v16  ;;  %v549_v24 = vpack.c.bf16 %v541_v17, %v540_v15  ;;  %v568_v26 = vmul.f32 %v1710_v52, %v1700_v47 }
 0x138   : > { %v579_v25 = vpack.c.bf16 %v564_v19, %v563_v18  ;;  %v569_v27 = vmul.f32 %v1710_v52, %v1702_v48  ;;  %557 = vst.msk [vmem:[#allocation4 + $0x30] sm:$0xff] %vm550_vm2, %v548_v20  ;;  %v570_v29 = vmul.f32 %v1710_v52, %v1704_v49  ;;  %v571_v30 = vmul.f32 %v1710_v52, %v1706_v50 }
 0x139   : > { %v580_v28 = vpack.c.bf16 %v566_v22, %v565_v21  ;;  %v572_v31 = vmul.f32 %v1710_v52, %v1708_v51  ;;  %558 = vst.msk [vmem:[#allocation4 + $0x38] sm:$0xff] %vm550_vm2, %v549_v24  ;;  %v581_v32 = vpack.c.bf16 %v568_v26, %v567_v23  ;;  %v573_v33 = vmul.f32 %v1710_v52, %v1718_v58 }
 0x13a   : > { %587 = vst.msk [vmem:[#allocation4 + $0x40] sm:$0xff] %vm550_vm2, %v579_v25  ;;  %v574_v34 = vmul.f32 %v1710_v52, %v1720_v59  ;;  %v575_v35 = vmul.f32 %v1710_v52, %v1726_v0  ;;  %v582_v36 = vpack.c.bf16 %v570_v29, %v569_v27  ;;  %v576_v40 = vmul.f32 %v1710_v52, %v1728_v1 }
 0x13b   : > { %588 = vst.msk [vmem:[#allocation4 + $0x48] sm:$0xff] %vm550_vm2, %v580_v28  ;;  %v583_v37 = vpack.c.bf16 %v572_v31, %v571_v30  ;;  %v577_v41 = vmul.f32 %v1710_v52, %v1730_v2  ;;  %589 = vst.msk [vmem:[#allocation4 + $0x50] sm:$0xff] %vm550_vm2, %v581_v32  ;;  %v578_v46 = vmul.f32 %v1710_v52, %v1734_v7 }
 0x13c   : > { %v584_v42 = vpack.c.bf16 %v574_v34, %v573_v33  ;;  %v599_v54 = vmul.f32 %v1712_v53, %v1690_v38  ;;  %v600_v55 = vmul.f32 %v1712_v53, %v1692_v39  ;;  %590 = vst.msk [vmem:[#allocation4 + $0x58] sm:$0xff] %vm550_vm2, %v582_v36  ;;  %v585_v56 = vpack.c.bf16 %v576_v40, %v575_v35 }
 0x13d   : > { %591 = vst.msk [vmem:[#allocation4 + $0x60] sm:$0xff] %vm550_vm2, %v583_v37  ;;  %v601_v57 = vmul.f32 %v1712_v53, %v1694_v43  ;;  %v602_v60 = vmul.f32 %v1712_v53, %v1696_v44  ;;  %v603_v52 = vmul.f32 %v1712_v53, %v1698_v45  ;;  %v586_v38 = vpack.c.bf16 %v578_v46, %v577_v41 }
 0x13e   : > { %592 = vst.msk [vmem:[#allocation4 + $0x68] sm:$0xff] %vm550_vm2, %v584_v42  ;;  %v615_v61 = vpack.c.bf16 %v600_v55, %v599_v54  ;;  %v604_v39 = vmul.f32 %v1712_v53, %v1700_v47  ;;  %v605_v62 = vmul.f32 %v1712_v53, %v1702_v48  ;;  %593 = vst.msk [vmem:[#allocation4 + $0x70] sm:$0xff] %vm550_vm2, %v585_v56 }
 0x13f   : > { %v616_v63 = vpack.c.bf16 %v602_v60, %v601_v57  ;;  %v606_v43 = vmul.f32 %v1712_v53, %v1704_v49  ;;  %v607_v44 = vmul.f32 %v1712_v53, %v1706_v50  ;;  %v608_v45 = vmul.f32 %v1712_v53, %v1708_v51  ;;  %594 = vst.msk [vmem:[#allocation4 + $0x78] sm:$0xff] %vm550_vm2, %v586_v38 }
 0x140   : > { %623 = vst.msk [vmem:[#allocation4 + $0x80] sm:$0xff] %vm550_vm2, %v615_v61  ;;  %v617_v47 = vpack.c.bf16 %v604_v39, %v603_v52  ;;  %v609_v48 = vmul.f32 %v1712_v53, %v1718_v58  ;;  %v610_v3 = vmul.f32 %v1712_v53, %v1720_v59  ;;  %v611_v49 = vmul.f32 %v1712_v53, %v1726_v0 }
 0x141   : > { %624 = vst.msk [vmem:[#allocation4 + $0x88] sm:$0xff] %vm550_vm2, %v616_v63  ;;  %v618_v50 = vpack.c.bf16 %v606_v43, %v605_v62  ;;  %v619_v4 = vpack.c.bf16 %v608_v45, %v607_v44  ;;  %v612_v51 = vmul.f32 %v1712_v53, %v1728_v1  ;;  %v613_v5 = vmul.f32 %v1712_v53, %v1730_v2 }
 0x142   : > { %625 = vst.msk [vmem:[#allocation4 + $0x90] sm:$0xff] %vm550_vm2, %v617_v47  ;;  %v620_v6 = vpack.c.bf16 %v610_v3, %v609_v48  ;;  %v614_v58 = vmul.f32 %v1712_v53, %v1734_v7 }
 0x143   : > { %626 = vst.msk [vmem:[#allocation4 + $0x98] sm:$0xff] %vm550_vm2, %v618_v50  ;;  %627 = vst.msk [vmem:[#allocation4 + $0xa0] sm:$0xff] %vm550_vm2, %v619_v4  ;;  %v621_v59 = vpack.c.bf16 %v612_v51, %v611_v49 }
 0x144   : > { %628 = vst.msk [vmem:[#allocation4 + $0xa8] sm:$0xff] %vm550_vm2, %v620_v6  ;;  %v622_v0 = vpack.c.bf16 %v614_v58, %v613_v5 }
 0x145   : > { %629 = vst.msk [vmem:[#allocation4 + $0xb0] sm:$0xff] %vm550_vm2, %v621_v59 }
 0x146   : > { %630 = vst.msk [vmem:[#allocation4 + $0xb8] sm:$0xff] %vm550_vm2, %v622_v0 }
 0x147 PF: > { %v656_v1 = vld [vmem:[#allocation4 + $0x40] sm:$0xff]  ;;  %v657_v9 = vld [vmem:[#allocation4 + $0x48] sm:$0xff]  ;;  %v658_v10 = vld [vmem:[#allocation4 + $0x50] sm:$0xff]  ;;  %s1097_s7 = sshll.u32 %s1413_s18, 6  ;;  %vm867_vm3 = vcmask 523264   ;;  %vm965_vm4 = vcmask 261120  }
 0x148   : > { %v648_v2 = vld [vmem:[#allocation4] sm:$0xff]  ;;  %1130 = vmatprep.subr.bf16.mxu0 %v656_v1  ;;  %v665_v53 = vld [vmem:[#allocation4 + $0x88] sm:$0xff]  ;;  %v650_v12 = vld [vmem:[#allocation4 + $0x10] sm:$0xff]  ;;  %s1843_s10 = scalar_lea.vmem [#allocation2], %s1097_s7  ;;  %s1847_s18 = scalar_lea.vmem [#allocation3], %s1097_s7 }
 0x149   : > { %v664_v8 = vld [vmem:[#allocation4 + $0x80] sm:$0xff]  ;;  %1131 = vmatpush3.bf16.msra.mxu0 %v648_v2  ;;  %v649_v7 = vld [vmem:[#allocation4 + $0x8] sm:$0xff]  ;;  %v666_v11 = vld [vmem:[#allocation4 + $0x90] sm:$0xff] }
 0x14a   : > { %1210 = vmatprep.subr.bf16.mxu1 %v664_v8  ;;  %1132 = vmatprep.subr.bf16.mxu0 %v657_v9  ;;  %v659_v13 = vld [vmem:[#allocation4 + $0x58] sm:$0xff]  ;;  %v1319_v15 = vld [vmem:[%s1565_s27 + $0x4] ss:$12 sps:$4 sm:$0xff]   ;;  %v1320_v16 = vld [vmem:[%s1565_s27 + $0x8] ss:$12 sps:$4 sm:$0xff]  }
 0x14b   : > { %1211 = vmatpush3.bf16.msra.mxu1 %v664_v8  ;;  %v667_v14 = vld [vmem:[#allocation4 + $0x98] sm:$0xff]  ;;  %v660_v18 = vld [vmem:[#allocation4 + $0x60] sm:$0xff]  ;;  %768 = vmatprep.mubr.bf16.mxu0 %v1319_v15  ;;  %v661_v21 = vld [vmem:[#allocation4 + $0x68] sm:$0xff] }
 0x14c   : > { %1212 = vmatprep.subr.bf16.mxu1 %v665_v53  ;;  %v651_v17 = vld [vmem:[#allocation4 + $0x18] sm:$0xff]  ;;  %v668_v19 = vld [vmem:[#allocation4 + $0xa0] sm:$0xff]  ;;  %1226 = vmatprep.mubr.bf16.mxu1 %v1320_v16  ;;  %v669_v22 = vld [vmem:[#allocation4 + $0xa8] sm:$0xff] }
 0x14d   : > { %1133 = vmatpush3.bf16.msra.mxu0 %v649_v7  ;;  %v652_v20 = vld [vmem:[#allocation4 + $0x20] sm:$0xff]  ;;  %v653_v23 = vld [vmem:[#allocation4 + $0x28] sm:$0xff]  ;;  %v662_v24 = vld [vmem:[#allocation4 + $0x70] sm:$0xff] }
 0x14e   : > { %1134 = vmatprep.subr.bf16.mxu0 %v658_v10  ;;  %v670_v25 = vld [vmem:[#allocation4 + $0xb0] sm:$0xff]  ;;  %v663_v27 = vld [vmem:[#allocation4 + $0x78] sm:$0xff]  ;;  %v1317_v30 = vld [vmem:[%s1565_s27] ss:$12 sps:$4 sm:$0xff]  }
 0x14f   : > { %1213 = vmatpush3.bf16.msra.mxu1 %v665_v53  ;;  %v654_v26 = vld [vmem:[#allocation4 + $0x30] sm:$0xff]  ;;  %v671_v28 = vld [vmem:[#allocation4 + $0xb8] sm:$0xff]  ;;  %v1321_v31 = vld [vmem:[%s1565_s27 + $0x20] ss:$12 sps:$4 sm:$0xff]  }
 0x150   : > { %1214 = vmatprep.subr.bf16.mxu1 %v666_v11  ;;  %v655_v29 = vld [vmem:[#allocation4 + $0x38] sm:$0xff]  ;;  %v1325_v36 = vld [vmem:[%s1565_s27 + $0x34] ss:$12 sps:$4 sm:$0xff]   ;;  %v878_v39 = vld [vmem:[%s1843_s10 + $0x8] sm:$0xff] }
 0x151   : > { %1135 = vmatpush3.bf16.msra.mxu0 %v650_v12  ;;  %v1322_v32 = vld [vmem:[%s1565_s27 + $0x1c] ss:$12 sps:$4 sm:$0xff]   ;;  %v1328_v33 = vld [vmem:[%s1565_s27 + $0x38] ss:$12 sps:$4 sm:$0xff]   ;;  %v886_v47 = vmul.f32 0.5, %v878_v39  ;;  %v879_v5 = vld [vmem:[%s1843_s10 + $0x10] sm:$0xff] }
 0x152   : > { %1136 = vmatprep.subr.bf16.mxu0 %v659_v13  ;;  %v1324_v34 = vld [vmem:[%s1565_s27 + $0x18] ss:$12 sps:$4 sm:$0xff]   ;;  %v1329_v35 = vld [vmem:[%s1565_s27 + $0x50] ss:$12 sps:$4 sm:$0xff]   ;;  %v1332_v41 = vld [vmem:[%s1565_s27 + $0x48] ss:$12 sps:$4 sm:$0xff]  }
 0x153   : > { %1215 = vmatpush3.bf16.msra.mxu1 %v666_v11  ;;  %v1327_v37 = vld [vmem:[%s1565_s27 + $0x30] ss:$12 sps:$4 sm:$0xff]   ;;  %v1330_v40 = vld [vmem:[%s1565_s27 + $0x4c] ss:$12 sps:$4 sm:$0xff]   ;;  %v877_v56 = vld [vmem:[%s1843_s10] sm:$0xff]  ;;  %s1434_s27 = smov 96  }
 0x154   : > { %1216 = vmatprep.subr.bf16.mxu1 %v667_v14  ;;  %v885_v43 = vmul.f32 0.5, %v877_v56  ;;  %v880_v9 = vld [vmem:[%s1843_s10 + $0x18] sm:$0xff]  ;;  %v887_v10 = vmul.f32 0.5, %v879_v5 }
 0x155   : > { %1137 = vmatpush3.bf16.msra.mxu0 %v651_v17 }
 0x156   : > { %1138 = vmatprep.subr.bf16.mxu0 %v660_v18 }
 0x157   : > { %1217 = vmatpush3.bf16.msra.mxu1 %v667_v14  ;;  %v888_v14 = vmul.f32 0.5, %v880_v9 }
 0x158   : > { %1218 = vmatprep.subr.bf16.mxu1 %v668_v19 }
 0x159   : > { %1139 = vmatpush3.bf16.msra.mxu0 %v652_v20 }
 0x15a   : > { %1140 = vmatprep.subr.bf16.mxu0 %v661_v21 }
 0x15b   : > { %1219 = vmatpush3.bf16.msra.mxu1 %v668_v19  ;;  %v881_v19 = vld [vmem:[%s1843_s10 + $0x20] sm:$0xff] }
 0x15c   : > { %1220 = vmatprep.subr.bf16.mxu1 %v669_v22 }
 0x15d   : > { %1141 = vmatpush3.bf16.msra.mxu0 %v653_v23 }
 0x15e   : > { %1142 = vmatprep.subr.bf16.mxu0 %v662_v24 }
 0x15f   : > { %1221 = vmatpush3.bf16.msra.mxu1 %v669_v22 }
 0x160   : > { %1222 = vmatprep.subr.bf16.mxu1 %v670_v25 }
 0x161   : > { %1143 = vmatpush3.bf16.msra.mxu0 %v654_v26 }
 0x162   : > { %1144 = vmatprep.subr.bf16.mxu0 %v663_v27 }
 0x163   : > { %1223 = vmatpush3.bf16.msra.mxu1 %v670_v25  ;;  %v882_v25 = vld [vmem:[%s1843_s10 + $0x28] sm:$0xff] }
 0x164   : > { %1224 = vmatprep.subr.bf16.mxu1 %v671_v28 }
 0x165   : > { %1145 = vmatpush3.bf16.msra.mxu0 %v655_v29 }
 0x167   : > { %1225 = vmatpush3.bf16.msra.mxu1 %v671_v28  ;;  %v889_v28 = vmul.f32 0.5, %v881_v19 }
 0x168   : > { %769 = vmatmul.mubr.bf16.vlgmr.msra.gmra.mrb[0].mxu0 %v1317_v30 }
 0x169   : > { %776 = vmatprep.mubr.bf16.mxu0 %v1322_v32  ;;  %v890_v32 = vmul.f32 0.5, %v882_v25 }
 0x16a   : > { %1227 = vmatmul.mubr.bf16.vlgmr.msra.gmra.mrb[0].mxu1 %v1321_v31 }
 0x16b   : > { %1230 = vmatprep.mubr.bf16.mxu1 %v1328_v33 }
 0x170   : > { %777 = vmatmul.mubr.bf16.gmra.mrb[4].mxu0 %v1324_v34 }
 0x171   : > { %784 = vmatprep.mubr.bf16.mxu0 %v1325_v36 }
 0x172   : > { %1231 = vmatmul.mubr.bf16.gmra.mrb[4].mxu1 %v1329_v35 }
 0x178   : > { %785 = vmatmul.mubr.bf16.gmra.mrb[8].mxu0 %v1327_v37  ;;  %v883_v37 = vld [vmem:[%s1843_s10 + $0x30] sm:$0xff] }
 0x179   : > { %792 = vmatprep.mubr.bf16.mxu0 %v1330_v40 }
 0x180   : > { %793 = vmatmul.mubr.bf16.gmra.mrb[12].mxu0 %v1332_v41 }
 0x23b   : > { %v1146_v42 = vpop.f32.mrb[0].mxu0 }
 0x23c   : > { %v1147_v54 = vpop.f32.mrb[1].mxu0 }
 0x23d   : > { %v1228_v46 = vpop.f32.mrb[0].mxu1  ;;  %v1148_v57 = vadd.f32 %v1147_v54, %v1146_v42  ;;  %v1149_v60 = vpop.f32.mrb[2].mxu0 }
 0x23e   : > { %v835_v55 = vpop.f32.mrb[1].mxu1  ;;  %v1150_v38 = vpop.f32.mrb[3].mxu0 }
 0x23f   : > { %v1229_v52 = vpop.f32.mrb[2].mxu1  ;;  %v1151_v62 = vadd.f32 %v1150_v38, %v1149_v60  ;;  %v836_v63 = vadd.f32 %v1148_v57, %v835_v55  ;;  %v884_v55 = vld [vmem:[%s1843_s10 + $0x38] sm:$0xff] }
 0x240   : > { %v838_v61 = vpop.f32.mrb[3].mxu1  ;;  %v892_v39 = vmul.f32 0.5, %v884_v55 }
 0x241   : > { %868 = vst.msk [vmem:[%s1847_s18] sm:$0xff] %vm867_vm3, %v836_v63  ;;  %v893_v44 = vmul.f32 0.5, %v836_v63  ;;  %v839_v45 = vadd.f32 %v1151_v62, %v838_v61 }
 0x243   : > { %869 = vst.msk [vmem:[%s1847_s18 + $0x8] sm:$0xff] %vm867_vm3, %v839_v45  ;;  %v894_v48 = vmul.f32 0.5, %v839_v45  ;;  %v1152_v3 = vpop.f32.mrb[4].mxu0  ;;  %v1853_v49 = vadd.f32 %v893_v44, %v885_v43 }
 0x244   : > { %v1153_v4 = vpop.f32.mrb[5].mxu0 }
 0x245   : > { %v1232_v50 = vpop.f32.mrb[4].mxu1  ;;  %v1154_v6 = vadd.f32 %v1153_v4, %v1152_v3  ;;  %v1155_v58 = vpop.f32.mrb[6].mxu0  ;;  %v909_v59 = vmax.f32 %v1853_v49, 0.0  ;;  %v1857_v0 = vadd.f32 %v894_v48, %v886_v47 }
 0x246   : > { %v851_v51 = vpop.f32.mrb[5].mxu1  ;;  %v1156_v2 = vpop.f32.mrb[7].mxu0 }
 0x247   : > { %v1233_v1 = vpop.f32.mrb[6].mxu1  ;;  %v844_v53 = vadd.f32 %v1228_v46, %v1154_v6  ;;  %v1157_v7 = vadd.f32 %v1156_v2, %v1155_v58  ;;  %925 = vrot.lane.b32.xlu0 %v909_v59, %s1434_s27  ;;  %v910_v12 = vmax.f32 %v1857_v0, 0.0 }
 0x248   : > { %v854_v8 = vpop.f32.mrb[7].mxu1 }
 0x249   : > { %870 = vst.msk [vmem:[%s1847_s18 + $0x10] sm:$0xff] %vm867_vm3, %v844_v53  ;;  %v847_v11 = vadd.f32 %v1229_v52, %v1157_v7  ;;  %v895_v13 = vmul.f32 0.5, %v844_v53  ;;  %v891_v52 = vmul.f32 0.5, %v883_v37 }
 0x24b   : > { %871 = vst.msk [vmem:[%s1847_s18 + $0x18] sm:$0xff] %vm867_vm3, %v847_v11  ;;  %v896_v15 = vmul.f32 0.5, %v847_v11  ;;  %v1158_v16 = vpop.f32.mrb[8].mxu0  ;;  %927 = vrot.lane.b32.xlu0 %v910_v12, %s1434_s27  ;;  %v903_v17 = vadd.f32 %v895_v13, %v887_v10 }
 0x24c   : > { %v1159_v18 = vpop.f32.mrb[9].mxu0 }
 0x24d   : > { %v1160_v20 = vadd.f32 %v1159_v18, %v1158_v16  ;;  %v1161_v21 = vpop.f32.mrb[10].mxu0  ;;  %v911_v22 = vmax.f32 %v903_v17, 0.0  ;;  %v904_v23 = vadd.f32 %v896_v15, %v888_v14 }
 0x24e   : > { %v1162_v24 = vpop.f32.mrb[11].mxu0 }
 0x24f   : > { %v1163_v26 = vadd.f32 %v1162_v24, %v1161_v21  ;;  %v852_v27 = vadd.f32 %v1160_v20, %v851_v51  ;;  %929 = vrot.lane.b32.xlu1 %v911_v22, %s1434_s27  ;;  %v912_v31 = vmax.f32 %v904_v23, 0.0 }
 0x251   : > { %872 = vst.msk [vmem:[%s1847_s18 + $0x20] sm:$0xff] %vm867_vm3, %v852_v27  ;;  %v897_v29 = vmul.f32 0.5, %v852_v27  ;;  %v855_v30 = vadd.f32 %v1163_v26, %v854_v8 }
 0x253   : > { %873 = vst.msk [vmem:[%s1847_s18 + $0x28] sm:$0xff] %vm867_vm3, %v855_v30  ;;  %v898_v33 = vmul.f32 0.5, %v855_v30  ;;  %v1164_v34 = vpop.f32.mrb[12].mxu0  ;;  %931 = vrot.lane.b32.xlu1 %v912_v31, %s1434_s27  ;;  %v905_v35 = vadd.f32 %v897_v29, %v889_v28 }
 0x254   : > { %v1165_v36 = vpop.f32.mrb[13].mxu0 }
 0x255   : > { %v1166_v40 = vadd.f32 %v1165_v36, %v1164_v34  ;;  %v1167_v41 = vpop.f32.mrb[14].mxu0  ;;  %v913_v42 = vmax.f32 %v905_v35, 0.0  ;;  %v906_v46 = vadd.f32 %v898_v33, %v890_v32 }
 0x256   : > { %v1168_v54 = vpop.f32.mrb[15].mxu0 }
 0x257   : > { %v860_v56 = vadd.f32 %v1232_v50, %v1166_v40  ;;  %v1169_v57 = vadd.f32 %v1168_v54, %v1167_v41  ;;  %933 = vrot.lane.b32.xlu0 %v913_v42, %s1434_s27  ;;  %v914_v60 = vmax.f32 %v906_v46, 0.0 }
 0x259   : > { %874 = vst.msk [vmem:[%s1847_s18 + $0x30] sm:$0xff] %vm867_vm3, %v860_v56  ;;  %v899_v38 = vmul.f32 0.5, %v860_v56  ;;  %v863_v61 = vadd.f32 %v1233_v1, %v1169_v57  ;;  %935 = vrot.lane.b32.xlu1 %v914_v60, %s1434_s27 }
 0x25b   : > { %875 = vst.msk [vmem:[%s1847_s18 + $0x38] sm:$0xff] %vm867_vm3, %v863_v61  ;;  %v900_v62 = vmul.f32 0.5, %v863_v61  ;;  %v907_v63 = vadd.f32 %v899_v38, %v891_v52 }
 0x25d   : > { %v915_v43 = vmax.f32 %v907_v63, 0.0  ;;  %v908_v44 = vadd.f32 %v900_v62, %v892_v39 }
 0x25f   : > { %937 = vrot.lane.b32.xlu0 %v915_v43, %s1434_s27  ;;  %v916_v45 = vmax.f32 %v908_v44, 0.0 }
 0x261   : > { %939 = vrot.lane.b32.xlu1 %v916_v45, %s1434_s27 }
 0x2b9   : > { %v926_v47 = vpop.permute.xlu0 %925 }
 0x2ba   : > { %v949_v48 = vadd.f32 %v926_v47, %v909_v59 }
 0x2bc   : > { %v957_v3 = vmul.f32 0.5, %v949_v48 }
 0x2bd   : > { %v928_v50 = vpop.permute.xlu0 %927 }
 0x2be   : > { %966 = vst.msk [vmem:[%s1584_s8] sm:$0xff] %vm965_vm4, %v957_v3  ;;  %v950_v4 = vadd.f32 %v928_v50, %v910_v12 }
 0x2c0   : > { %v958_v51 = vmul.f32 0.5, %v950_v4 }
 0x2c1   : > { %v930_v5 = vpop.permute.xlu1 %929 }
 0x2c2   : > { %967 = vst.msk [vmem:[%s1584_s8 + $0x8] sm:$0xff] %vm965_vm4, %v958_v51  ;;  %v951_v6 = vadd.f32 %v930_v5, %v911_v22 }
 0x2c4   : > { %v959_v58 = vmul.f32 0.5, %v951_v6 }
 0x2c5   : > { %v932_v0 = vpop.permute.xlu1 %931 }
 0x2c6   : > { %968 = vst.msk [vmem:[%s1584_s8 + $0x10] sm:$0xff] %vm965_vm4, %v959_v58  ;;  %v952_v49 = vadd.f32 %v932_v0, %v912_v31 }
 0x2c8   : > { %v960_v59 = vmul.f32 0.5, %v952_v49 }
 0x2c9   : > { %v934_v1 = vpop.permute.xlu0 %933 }
 0x2ca   : > { %969 = vst.msk [vmem:[%s1584_s8 + $0x18] sm:$0xff] %vm965_vm4, %v960_v59  ;;  %v953_v2 = vadd.f32 %v934_v1, %v913_v42 }
 0x2cb   : > { %v936_v8 = vpop.permute.xlu1 %935 }
 0x2cc   : > { %v961_v9 = vmul.f32 0.5, %v953_v2  ;;  %v954_v53 = vadd.f32 %v936_v8, %v914_v60 }
 0x2ce   : > { %970 = vst.msk [vmem:[%s1584_s8 + $0x20] sm:$0xff] %vm965_vm4, %v961_v9  ;;  %v962_v7 = vmul.f32 0.5, %v954_v53 }
 0x2d0   : > { %971 = vst.msk [vmem:[%s1584_s8 + $0x28] sm:$0xff] %vm965_vm4, %v962_v7 }
 0x2d1   : > { %v938_v10 = vpop.permute.xlu0 %937 }
 0x2d2   : > { %v955_v11 = vadd.f32 %v938_v10, %v915_v43 }
 0x2d3   : > { %v940_v12 = vpop.permute.xlu1 %939 }
 0x2d4   : > { %v963_v13 = vmul.f32 0.5, %v955_v11  ;;  %v956_v14 = vadd.f32 %v940_v12, %v916_v45 }
 0x2d6   : > { %972 = vst.msk [vmem:[%s1584_s8 + $0x30] sm:$0xff] %vm965_vm4, %v963_v13  ;;  %v964_v15 = vmul.f32 0.5, %v956_v14 }
 0x2d8   : > { %973 = vst.msk [vmem:[%s1584_s8 + $0x38] sm:$0xff] %vm965_vm4, %v964_v15 }
 0x2d9 PF: > { %s17_s22 = sadd.s32 1, %s1429_s22   ;;  %s1936_s15 = smov %s1405_s16 }
 0x2da   : > { %p14_p11 = scmp.ge.s32.totalorder %s17_s22, 6   ;;  %s1937_s16 = smov %s1409_s17 }
 0x2db   : > { %s1938_s17 = smov %s1514_s28  ;;  %s1939_s18 = smov %s1421_s20 }
 0x2dc   : > { %s1940_s19 = smov %s1425_s21  ;;  %s1941_s20 = smov %s1944_s24 }
 0x2dd   : > { %s1942_s21 = smov %s1948_s25  ;;  %16 = sbr.rel (!%p14_p11) target bundleno = 5 (0x5), region = 89 }
 0x2e4   :  { %996 = vsyncpa [#allocation6], 1 }
 0x2e5   :  { %998 = vsyncpa [#allocation6 + $0x1], 1 }

</bundles_post_ra>
